<compile_context>
chip_gen: v7x
topology: tpu7x:2x2x1
jax: 0.10.0
libtpu: 0.0.40
codegen_flags: <defaults>
</compile_context>

<pallas_src>
import functools

import jax
import jax.numpy as jnp
from jax.experimental import pallas as pl
from jax.experimental.pallas import tpu as pltpu


def _round_up(x, m):
    return (x + m - 1) // m * m


_VMEM_LIMIT = 40 * 1024 * 1024   # > default scoped limit, leaves headroom on v7x (64 MiB)
_TK_BASE = 256                   # matches v6e/v7x 256-wide MXU; fine on v5e (multi-pass)
_TQ_BASE = 512                   # bigger q tile => less K/V re-streaming


def _choose_tiles(T):
    """Pick (tq, tk) with tq a multiple of tk so the causal schedule math is exact."""
    if T <= _TK_BASE:
        t = _round_up(T, 16)     # 16: safe sublane multiple for bf16 packing
        return t, t
    tk = _TK_BASE
    tq = min(_TQ_BASE, _round_up(T, tk))
    return tq, tk


# ---------------------------------------------------------------------------
# Stage 1: QKV projection, one projection (d_p-wide, lane-dense) per grid step.
# ---------------------------------------------------------------------------
def _qkv_proj_kernel(x_ref, w_ref, qkv_ref):
    # x_ref: (1, tq, d_in_p) bf16; w_ref: (d_in_p, d_p) bf16; qkv_ref: (1, tq, d_p) bf16
    qkv_ref[0] = jnp.dot(
        x_ref[0], w_ref[...], preferred_element_type=jnp.float32
    ).astype(qkv_ref.dtype)


# ---------------------------------------------------------------------------
# Stage 2: flash attention over a flattened causal (qi, ki) schedule.
# ---------------------------------------------------------------------------
def _flash_kernel(qi_ref, ki_ref, q_ref, k_ref, v_ref, o_ref,
                  m_sc, l_sc, acc_sc, *, tq, tk, r, seq_len, kv_resident):
    s_idx = pl.program_id(1)
    qi = qi_ref[s_idx]
    ki = ki_ref[s_idx]
    q_start = qi * tq
    k_start = ki * tk

    @pl.when(ki == 0)
    def _init():
        m_sc[...] = jnp.full_like(m_sc, -jnp.inf)
        l_sc[...] = jnp.zeros_like(l_sc)
        acc_sc[...] = jnp.zeros_like(acc_sc)

    q = q_ref[0]                                  # (tq, d_p) bf16, pre-scaled by 1/sqrt(d_out)
    if kv_resident:
        k_off = pl.multiple_of(ki * tk, tk)
        k = k_ref[0, pl.ds(k_off, tk), :]          # (tk, d_p) bf16
        v = v_ref[0, pl.ds(k_off, tk), :]
    else:
        k = k_ref[0]                               # (tk, d_p) bf16
        v = v_ref[0]

    # scores = q @ k^T on the MXU (bf16 in, f32 out); contract last dims, no transpose.
    s = jax.lax.dot_general(
        q, k, dimension_numbers=(((1,), (1,)), ((), ())),
        preferred_element_type=jnp.float32)        # (tq, tk) f32

    def _update(scores):
        m_prev = m_sc[...]                                         # (tq, 1)
        m_new = jnp.maximum(m_prev, jnp.max(scores, axis=-1, keepdims=True))
        alpha = jnp.exp(m_prev - m_new)
        p = jnp.exp(scores - m_new)                                # (tq, tk) f32
        l_sc[...] = alpha * l_sc[...] + jnp.sum(p, axis=-1, keepdims=True)
        acc_sc[...] = alpha * acc_sc[...] + jnp.dot(
            p.astype(v.dtype), v, preferred_element_type=jnp.float32)
        m_sc[...] = m_new

    # Interior tiles (fully below the diagonal, no kv padding) need no mask at all.
    interior = (k_start + tk <= q_start + 1) & (k_start + tk <= seq_len)

    @pl.when(interior)
    def _no_mask():
        _update(s)

    @pl.when(jnp.logical_not(interior))
    def _masked():
        # Causal mask (matches torch.triu(..., diagonal=1)) + kv padding mask.
        row = q_start + jax.lax.broadcasted_iota(jnp.int32, (tq, tk), 0)
        col = k_start + jax.lax.broadcasted_iota(jnp.int32, (tq, tk), 1)
        valid = (col <= row) & (col < seq_len)
        _update(jnp.where(valid, s, -jnp.inf))

    # Last kv tile for this q tile (schedule guarantees t_pad % tq == 0, tq == r*tk).
    @pl.when(ki == (qi + 1) * r - 1)
    def _finalize():
        # Dropout p=0.0 -> identity.
        # TODO(synk): non-zero dropout would need pltpu.prng_seed + stateful_bernoulli.
        l = l_sc[...]
        inv_l = pl.reciprocal(l, approx=True)      # EUP vrcp (free slot)
        inv_l = inv_l * (2.0 - l * inv_l)          # one Newton step -> ~f32 accuracy
        o_ref[0] = (acc_sc[...] * inv_l).astype(o_ref.dtype)


# ---------------------------------------------------------------------------
# Wrapper.
# ---------------------------------------------------------------------------
def causal_attention(x, w_query, w_key, w_value, *, kv_resident=None):
    """x: (B, T, d_in); w_*: (d_in, d_out) -> (B, T, d_out). Causal, dropout=0."""
    B, T, d_in = x.shape
    d_out = w_query.shape[1]

    tq, tk = _choose_tiles(T)
    t_pad = _round_up(T, tq)          # tq is a multiple of tk => t_pad divisible by both
    d_in_p = _round_up(d_in, 128)
    d_p = _round_up(d_out, 128)
    nq = t_pad // tq
    r = tq // tk

    scale = 1.0 / (d_out ** 0.5)

    # bf16 activations/weights feed the MXU natively; accumulate in f32.
    x_p = jnp.zeros((B, t_pad, d_in_p), jnp.bfloat16).at[:, :T, :d_in].set(
        x.astype(jnp.bfloat16))
    # Fold 1/sqrt(d_out) into W_query in f32, THEN cast to bf16 (keeps weight precision).
    w_qkv = jnp.zeros((d_in_p, 3 * d_p), jnp.float32)
    w_qkv = w_qkv.at[:d_in, 0:d_out].set(w_query.astype(jnp.float32) * scale)
    w_qkv = w_qkv.at[:d_in, d_p:d_p + d_out].set(w_key.astype(jnp.float32))
    w_qkv = w_qkv.at[:d_in, 2 * d_p:2 * d_p + d_out].set(w_value.astype(jnp.float32))
    w_qkv = w_qkv.astype(jnp.bfloat16)

    # --- Stage 1: QKV projection, grid (B, nq, 3); the 3*d_p output dim is tiled
    # one projection at a time so the weight block stays VMEM-friendly on v7x.
    # TODO(synk): for very large d_in the (d_in_p, d_p) weight block would also
    # need a K-dim grid axis + f32 accumulator scratch.
    qkv = pl.pallas_call(
        _qkv_proj_kernel,
        out_shape=jax.ShapeDtypeStruct((B, t_pad, 3 * d_p), jnp.bfloat16),
        grid_spec=pltpu.PrefetchScalarGridSpec(
            num_scalar_prefetch=0,
            grid=(B, nq, 3),
            in_specs=[
                pl.BlockSpec((1, tq, d_in_p), lambda b, i, n: (b, i, 0)),
                pl.BlockSpec((d_in_p, d_p), lambda b, i, n: (0, n)),
            ],
            out_specs=pl.BlockSpec((1, tq, d_p), lambda b, i, n: (b, i, n)),
        ),
        compiler_params=pltpu.CompilerParams(
            dimension_semantics=("parallel", "parallel", "parallel"),
            vmem_limit_bytes=_VMEM_LIMIT),
    )(x_p, w_qkv)

    # --- Causal (qi, ki) schedule: only tiles at/below the diagonal appear, so
    # skipped kv tiles cost neither DMA nor the ~0.35us/step grid overhead.
    sched_qi, sched_ki = [], []
    for qi in range(nq):
        last_ki = (qi + 1) * r - 1
        for ki in range(last_ki + 1):
            sched_qi.append(qi)
            sched_ki.append(ki)
    n_sched = len(sched_qi)
    sched_qi = jnp.asarray(sched_qi, jnp.int32)
    sched_ki = jnp.asarray(sched_ki, jnp.int32)

    if kv_resident is None:
        # K + V, double-buffered, bf16: keep well under VMEM on all gens (incl. v7x 64 MiB).
        kv_resident = (2 * 2 * t_pad * d_p * 2) <= 16 * 1024 * 1024

    if kv_resident:
        # Whole (padded) K / V sequence resident in VMEM per batch element;
        # the kernel slices the ki-th tile with pl.ds. Removes nq-fold re-reads.
        k_spec = pl.BlockSpec((1, t_pad, d_p), lambda b, s, qi_s, ki_s: (b, 0, 1))
        v_spec = pl.BlockSpec((1, t_pad, d_p), lambda b, s, qi_s, ki_s: (b, 0, 2))
    else:
        k_spec = pl.BlockSpec((1, tk, d_p), lambda b, s, qi_s, ki_s: (b, ki_s[s], 1))
        v_spec = pl.BlockSpec((1, tk, d_p), lambda b, s, qi_s, ki_s: (b, ki_s[s], 2))

    kernel = functools.partial(_flash_kernel, tq=tq, tk=tk, r=r,
                               seq_len=T, kv_resident=kv_resident)
    out_p = pl.pallas_call(
        kernel,
        out_shape=jax.ShapeDtypeStruct((B, t_pad, d_p), x.dtype),
        grid_spec=pltpu.PrefetchScalarGridSpec(
            num_scalar_prefetch=2,
            grid=(B, n_sched),
            in_specs=[
                pl.BlockSpec((1, tq, d_p), lambda b, s, qi_s, ki_s: (b, qi_s[s], 0)),  # Q
                k_spec,                                                                # K
                v_spec,                                                                # V
            ],
            out_specs=pl.BlockSpec((1, tq, d_p),
                                   lambda b, s, qi_s, ki_s: (b, qi_s[s], 0)),
            scratch_shapes=[
                pltpu.VMEM((tq, 1), jnp.float32),    # m (running max)
                pltpu.VMEM((tq, 1), jnp.float32),    # l (running denom)
                pltpu.VMEM((tq, d_p), jnp.float32),  # acc
            ],
        ),
        compiler_params=pltpu.CompilerParams(
            dimension_semantics=("parallel", "arbitrary"),
            vmem_limit_bytes=_VMEM_LIMIT),
    )(sched_qi, sched_ki, qkv, qkv, qkv)

    return out_p[:, :T, :d_out]


# ---------------------------------------------------------------------------
# Pure-JAX reference (mirrors the PyTorch module's forward), f32.
# ---------------------------------------------------------------------------
def _reference(x, wq, wk, wv):
    q = x @ wq
    k = x @ wk
    v = x @ wv
    scores = jnp.einsum("btd,bsd->bts", q, k)
    T = x.shape[1]
    mask = jnp.triu(jnp.ones((T, T), dtype=bool), k=1)
    scores = jnp.where(mask[None], -jnp.inf, scores)
    w = jax.nn.softmax(scores / (k.shape[-1] ** 0.5), axis=-1)
    return jnp.einsum("bts,bsd->btd", w, v)


if __name__ == "__main__":
    # --- Test 1: shapes implied by the module's example usage ---
    #   inputs: (6, 3), batch = stack -> (2, 6, 3), d_in=3, d_out=2, dropout=0.0
    inputs = jnp.array(
        [[0.43, 0.15, 0.89],
         [0.55, 0.87, 0.66],
         [0.57, 0.85, 0.64],
         [0.22, 0.58, 0.33],
         [0.77, 0.25, 0.10],
         [0.05, 0.80, 0.55]], dtype=jnp.float32)
    batch = jnp.stack((inputs, inputs), axis=0)          # (2, 6, 3)

    d_in, d_out = 3, 2
    key = jax.random.PRNGKey(0)
    kq, kk, kv, kx = jax.random.split(key, 4)
    bound = 1.0 / (d_in ** 0.5)
    w_query = jax.random.uniform(kq, (d_in, d_out), jnp.float32, -bound, bound)
    w_key = jax.random.uniform(kk, (d_in, d_out), jnp.float32, -bound, bound)
    w_value = jax.random.uniform(kv, (d_in, d_out), jnp.float32, -bound, bound)

    out = causal_attention(batch, w_query, w_key, w_value)
    out = jax.block_until_ready(out)
    ref = _reference(batch, w_query, w_key, w_value)
    assert out.shape == (2, 6, 2)
    assert jnp.allclose(out, ref, atol=2e-2, rtol=2e-2)

    # --- Test 2: multi-kv-tile, resident-K/V path, edge masking + seq padding ---
    B2, T2, d_in2, d_out2 = 2, 300, 48, 64
    x2 = jax.random.normal(kx, (B2, T2, d_in2), jnp.float32)
    kq2, kk2, kv2 = jax.random.split(kq, 3)
    b2 = 1.0 / (d_in2 ** 0.5)
    wq2 = jax.random.uniform(kq2, (d_in2, d_out2), jnp.float32, -b2, b2)
    wk2 = jax.random.uniform(kk2, (d_in2, d_out2), jnp.float32, -b2, b2)
    wv2 = jax.random.uniform(kv2, (d_in2, d_out2), jnp.float32, -b2, b2)

    out2 = causal_attention(x2, wq2, wk2, wv2)
    out2 = jax.block_until_ready(out2)
    ref2 = _reference(x2, wq2, wk2, wv2)
    assert out2.shape == (B2, T2, d_out2)
    assert jnp.allclose(out2, ref2, atol=2e-2, rtol=2e-2)

    # --- Test 3: multi-q-tile, streamed-K/V path (exercises the interior fast path,
    #             the causal schedule with nq=2, and q/kv padding) ---
    B3, T3, d_in3, d_out3 = 2, 700, 48, 32
    kx3, kq3, kk3, kv3 = jax.random.split(kk, 4)
    x3 = jax.random.normal(kx3, (B3, T3, d_in3), jnp.float32)
    b3 = 1.0 / (d_in3 ** 0.5)
    wq3 = jax.random.uniform(kq3, (d_in3, d_out3), jnp.float32, -b3, b3)
    wk3 = jax.random.uniform(kk3, (d_in3, d_out3), jnp.float32, -b3, b3)
    wv3 = jax.random.uniform(kv3, (d_in3, d_out3), jnp.float32, -b3, b3)

    out3 = causal_attention(x3, wq3, wk3, wv3, kv_resident=False)
    out3 = jax.block_until_ready(out3)
    ref3 = _reference(x3, wq3, wk3, wv3)
    assert out3.shape == (B3, T3, d_out3)
    assert jnp.allclose(out3, ref3, atol=2e-2, rtol=2e-2)

    print("KERNEL_OK")
</pallas_src>

<mosaic_0001>
module attributes {stable_mosaic.version = 11 : i64} {
  func.func @_qkv_proj_kernel(%arg0: i32, %arg1: i32, %arg2: i32, %arg3: memref<1x16x128xbf16, #tpu.memory_space<vmem>>, %arg4: memref<128x128xbf16, #tpu.memory_space<vmem>>, %arg5: memref<1x16x128xbf16, #tpu.memory_space<vmem>>) attributes {dimension_semantics = [#tpu.dimension_semantics<parallel>, #tpu.dimension_semantics<parallel>, #tpu.dimension_semantics<parallel>], iteration_bounds = array<i64: 2, 1, 3>, scalar_prefetch = 0 : i64, scratch_operands = 0 : i64, tpu.core_type = #tpu.core_type<tc>, window_params = [{transform_indices = @transform_0, window_bounds = array<i64: 1, 16, 128>}, {transform_indices = @transform_1, window_bounds = array<i64: 128, 128>}, {transform_indices = @transform_2, window_bounds = array<i64: 1, 16, 128>}]} {
    %c0 = arith.constant 0 : index
    %c0_0 = arith.constant 0 : index
    %c0_1 = arith.constant 0 : index
    %0 = vector.load %arg3[%c0, %c0_0, %c0_1] : memref<1x16x128xbf16, #tpu.memory_space<vmem>>, vector<1x16x128xbf16>
    %1 = vector.shape_cast %0 : vector<1x16x128xbf16> to vector<16x128xbf16>
    %c0_2 = arith.constant 0 : index
    %c0_3 = arith.constant 0 : index
    %2 = vector.load %arg4[%c0_2, %c0_3] : memref<128x128xbf16, #tpu.memory_space<vmem>>, vector<128x128xbf16>
    %cst = arith.constant dense<0.000000e+00> : vector<16x128xf32>
    %3 = tpu.matmul %1, %2, %cst {dimension_numbers = #tpu.dot_dimension_numbers<[1], [0], [0], [1], [0, 0, 1, 1], [], []>} : vector<16x128xbf16>, vector<128x128xbf16>, vector<16x128xf32> -> vector<16x128xf32>
    %4 = arith.truncf %3 : vector<16x128xf32> to vector<16x128xbf16>
    %c0_4 = arith.constant 0 : index
    %c0_5 = arith.constant 0 : index
    %c0_6 = arith.constant 0 : index
    %5 = vector.load %arg5[%c0_4, %c0_5, %c0_6] : memref<1x16x128xbf16, #tpu.memory_space<vmem>>, vector<1x16x128xbf16>
    %6 = vector.shape_cast %5 : vector<1x16x128xbf16> to vector<16x128xbf16>
    %7 = vector.shape_cast %4 : vector<16x128xbf16> to vector<1x16x128xbf16>
    tpu.vector_store %arg5[%c0_4, %c0_5, %c0_6], %7 {strides = array<i32>} : memref<1x16x128xbf16, #tpu.memory_space<vmem>>, vector<1x16x128xbf16>,
    return
  }
  func.func @transform_0(%arg0: i32, %arg1: i32, %arg2: i32) -> (i32, i32, i32) {
    %c0_i32 = arith.constant 0 : i32
    %c0_i32_0 = arith.constant 0 : i32
    return %arg0, %arg1, %c0_i32 : i32, i32, i32
  }
  func.func @transform_1(%arg0: i32, %arg1: i32, %arg2: i32) -> (i32, i32) {
    %c0_i32 = arith.constant 0 : i32
    %c0_i32_0 = arith.constant 0 : i32
    return %c0_i32, %arg2 : i32, i32
  }
  func.func @transform_2(%arg0: i32, %arg1: i32, %arg2: i32) -> (i32, i32, i32) {
    %c0_i32 = arith.constant 0 : i32
    return %arg0, %arg1, %arg2 : i32, i32, i32
  }
}

</mosaic_0001>

<bundles_post_ra>
// kernel: tpu_custom_call.1
= control target key start
LH: loop header
LB: loop body
LE: loop exit
PB: predicated region body
PF: predicated region fallthrough
CT: control target
= control target key end

     0   :  { %s1291_s0 = inlined_call_operand.hbm [shape: bf16[2,16,128], index: 0, kind: input, shape index: {}]   ;;  %s1292_s1 = inlined_call_operand.hbm [shape: bf16[128,384], index: 1, kind: input, shape index: {}]   ;;  %s1293_s2 = inlined_call_operand.hbm [shape: bf16[2,16,384], index: 2, kind: output, shape index: {}]  }
   0x1   :  { %1307 = sst [smem:[#allocation17_spill]] %s1291_s0 }
   0x2   :  { %1308 = sst [smem:[#allocation18_spill]] %s1293_s2 }
   0x3   :  { %7 = vsyncpa [#allocation3], 0 }
   0x4   :  { %9 = vsyncpa [#allocation3 + $0x1], 0 }
   0x5   :  { %10 = vsyncpa [#allocation6], 0 }
   0x6   :  { %12 = vsyncpa [#allocation6 + $0x1], 0 }
   0x7   :  { %13 = vsyncpa [#allocation4], 0 }
   0x8   :  { %15 = vsyncpa [#allocation4 + $0x1], 0  ;;  %s941_s9 = smov 0   ;;  %s943_s10 = smov 0  }
   0x9   :  { %s945_s11 = smov 0   ;;  %s947_s12 = smov 0  }
   0xa   :  { %s949_s13 = smov 0   ;;  %s951_s14 = smov 0  }
   0xb   :  { %s953_s15 = smov 0   ;;  %s955_s16 = smov 0  }
   0xc   :  { %s957_s17 = smov 0   ;;  %s959_s18 = smov 0  }
   0xd   :  { %s961_s19 = smov 0   ;;  %s963_s20 = smov 0  }
   0xe   :  { %s965_s21 = smov 0   ;;  %s967_s22 = smov 0  }
   0xf LB: > { %1309 = sst [smem:[#allocation11_spill]] %s897_s18  ;;  %s489_s23 = sadd.s32 4294967295, %s913_s22   ;;  %s913_s22 = sphi %s967_s22, %s21_s22   ;;  %s909_s21 = sphi %s965_s21, %s1343_s21   ;;  %s905_s20 = sphi %s963_s20, %s1354_s20   ;;  %s901_s19 = sphi %s961_s19, %s1341_s19   ;;  %s897_s18 = sphi %s959_s18, %s1353_s18   ;;  %s893_s17 = sphi %s957_s17, %s1352_s17   ;;  %s889_s16 = sphi %s955_s16, %s1351_s16   ;;  %s885_s15 = sphi %s953_s15, %s1350_s15   ;;  %s881_s14 = sphi %s951_s14, %s1349_s14   ;;  %s877_s13 = sphi %s949_s13, %s1348_s13   ;;  %s873_s12 = sphi %s947_s12, %s1347_s12   ;;  %s869_s11 = sphi %s945_s11, %s1346_s11   ;;  %s865_s10 = sphi %s943_s10, %s1345_s10   ;;  %s861_s9 = sphi %s941_s9, %s1344_s9  }
  0x10   : > { %1310 = sst [smem:[#allocation12_spill]] %s909_s21  ;;  %s40_s24 = sadd.s32 1, %s909_s21 }
  0x11   : > { %p56_p0 = scmp.ne.s32.totalorder %s893_s17, %s889_s16  ;;  %p1295_p1 = scmp.eq.s32.totalorder %s913_s22, 0 }
  0x12   : > { %p62_p2 = scmp.ne.s32.totalorder %s889_s16, %s885_s15  ;;  %p1016_p3 = scmp.eq.s32.totalorder %s489_s23, 0 }
  0x13   : > { %p1020_p4 = scmp.eq.s32.totalorder %s489_s23, 5  ;;  %p58_p5 = por %p1295_p1, %p56_p0 }
  0x14   : > { %p1028_p6 = por %p1016_p3, %p62_p2  ;;  %p1294_p7 = scmp.lt.s32.totalorder %s913_s22, 6 }
  0x15   : > { %s1312_s27 = scalar_select %p1020_p4, 1, 0 }
  0x16   : > { %s1313_s28 = scalar_select %p1028_p6, 1, 0 }
  0x17   : > { %s142_s29 = sand.u32 1, %s893_s17   ;;  %s517_s30 = sshll.u32 %s909_s21, 7 }
  0x18   : > { %s493_s3 = sshll.u32 %s142_s29, 3  ;;  %s1314_s0 = sld [smem:[#allocation17_spill]] }
  0x19   : > { %s146_s7 = scalar_lea.vmem [#allocation2], %s493_s3  ;;  %p1042_p8 = pnand %p1294_p7, %p58_p5 }
  0x1a   : > { %s155_s8 = sshll.u32 %s146_s7, 4  ;;  %s1048_s23 = scalar_lea.sflag [#allocation3], %s142_s29  ;;  %s1046_s8 = int_to_ptr.vmem [resolvable:$true] %s155_s8 }
  0x1b   : > { %p705_p10 = pneg %p1042_p8 }
  0x1e   : > { %s1038_s6 = scalar_lea.hbm %s1314_s0, %s517_s30  ;;  %s708_s5 = scalar_lea.hbm %s1314_s0, 256 }
  0x1f   : > { %s703_s4 = scalar_lea.hbm %s1038_s6, 128  ;;  %p709_p13 = scmp.lt.u32.totalorder %s1038_s6, %s1314_s0 }
  0x20   : > { %p704_p9 = scmp.ne.s32.totalorder %s1038_s6, %s703_s4  ;;  %p710_p0 = scmp.lt.u32.totalorder %s708_s5, %s703_s4 }
  0x21   : > { %p712_p5 = scmp.lt.u32.totalorder %s703_s4, %s1038_s6 }
  0x22   : > { %p706_p11 = pnand %p705_p10, %p704_p9  ;;  %p711_p2 = por %p710_p0, %p709_p13 }
  0x24   : > { %p707_p12 = pneg %p706_p11  ;;  %p713_p7 = por %p712_p5, %p711_p2 }
  0x26   : > { %p714_p1 = pnand %p713_p7, %p707_p12 }
  0x28   : > { %717 = shalt.err (!%p714_p1)
}
  0x29   : > { %s718_s29 = scalar_lea.vmem %s1046_s8, 128  ;;  %s915_s30 = smov [#allocation2]  }
  0x2a   : > { %p719_p9 = scmp.ne.s32.totalorder %s1046_s8, %s718_s29  ;;  %s723_s3 = sshll.u32 %s915_s30, 4  ;;  %s724_s3 = int_to_ptr.vmem [resolvable:$false] %s723_s3 }
  0x2b   : > { %s725_s25 = scalar_lea.vmem %s724_s3, 256  ;;  %p726_p4 = scmp.lt.s32.totalorder %s1046_s8, %s724_s3 }
  0x2c   : > { %p721_p11 = pnand %p719_p9, %p705_p10  ;;  %p727_p13 = scmp.lt.s32.totalorder %s725_s25, %s718_s29 }
  0x2e   : > { %p722_p6 = pneg %p721_p11  ;;  %p728_p0 = por %p727_p13, %p726_p4 }
  0x30   : > { %p729_p2 = pnand %p728_p0, %p722_p6 }
  0x32   : > { %732 = shalt.err (!%p729_p2)
}
  0x33   : > { %s1297_s4 = smov 64   ;;  %s1298_s5 = smov 4  }
  0x34   : > { %564 = dma.hbm_to_vmem [thread:$0]  (!%p1042_p8), %s1038_s6, 128, %s1046_s8, %s1048_s23, %s1297_s4, %s1297_s4, %s1298_s5  }
  0x35   : > { %p498_p1 = scmp.ge.s32.totalorder %s913_s22, 1  ;;  %p183_p4 = scmp.lt.s32.totalorder %s913_s22, 7 }
  0x36   : > { %s490_s29 = sadd.s32 4294967294, %s913_s22   ;;  %s33_s30 = sadd.s32 1, %s905_s20 }
  0x37   : > { %p1081_p6 = pnand %p498_p1, %p183_p4  ;;  %s75_s3 = sadd.s32 1, %s881_s14 }
  0x38   : > { %p34_p7 = scmp.ge.s32.totalorder %s33_s30, 3  ;;  %p82_p10 = scmp.ne.s32.totalorder %s881_s14, %s877_s13 }
  0x39   : > { %p88_p12 = scmp.ne.s32.totalorder %s877_s13, %s873_s12  ;;  %s105_s15 = sadd.s32 1, %s869_s11 }
  0x3a   : > { %s1356_s30 = smov (%p34_p7, %s33_s30), 0  ;;  %s1358_s24 = smov (!%p34_p7, %s40_s24), %s909_s21 }
  0x3b   : > { %1317 = sst [smem:[#allocation13_spill]] %s1356_s30  ;;  %s72_s6 = ssub.s32 %s905_s20, %s1356_s30 }
  0x3c   : > { %p1318_p8 = scmp.eq.s32.totalorder %s913_s22, 0  ;;  %p42_p9 = scmp.ge.s32.totalorder %s1358_s24, 2 }
  0x3d   : > { %p73_p11 = scmp.eq.s32.totalorder %s72_s6, 0  ;;  %p1108_p13 = por %p88_p12, %p1016_p3 }
  0x3e   : > { %p1102_p5 = por %p82_p10, %p1318_p8  ;;  %p115_p0 = scmp.ne.s32.totalorder %s869_s11, %s865_s10 }
  0x3f   : > { %s1320_s12 = scalar_select %p1108_p13, 1, 0 }
  0x40   : > { %s1360_s24 = smov (%p42_p9, %s1358_s24), 0  ;;  %p1323_p2 = scmp.ne.s32.totalorder %s1312_s27, 0 }
  0x41   : > { %1321 = sst [smem:[#allocation14_spill]] %s1360_s24  ;;  %s44_s25 = ssub.s32 %s909_s21, %s1360_s24 }
  0x42   : > { %s1117_s23 = scalar_select %p73_p11, %s881_s14, %s75_s3  }
  0x43   : > { %p1123_p1 = por %p1323_p2, %p115_p0  ;;  %p47_p4 = scmp.eq.s32.totalorder %s44_s25, 0 }
  0x44   : > { %1322 = sst [smem:[#allocation15_spill]] %s1117_s23  ;;  %s102_s26 = sor.u32 %s72_s6, %s44_s25 }
  0x45   : > { %s1324_s4 = scalar_select %p1123_p1, 1, 0 }
  0x46   : > { %p103_p3 = scmp.eq.s32.totalorder %s102_s26, 0  ;;  %p121_p7 = scmp.ne.s32.totalorder %s865_s10, %s861_s9 }
  0x47   : > { %1325 = sst [smem:[#allocation16_spill]] %s1324_s4  ;;  %s1326_s5 = sadd.s32 1, %s893_s17 }
  0x48   : > { %s1132_s0 = scalar_select %p47_p4, %s893_s17, %s1326_s5  }
  0x49   : > { %s1135_s30 = scalar_select %p103_p3, %s869_s11, %s105_s15  }
  0x4a   : > { %p122_p10 = scmp.eq.s32.totalorder %s490_s29, 5  ;;  %s165_s3 = sand.u32 1, %s881_s14  }
  0x4b   : > { %s496_s23 = sshll.u32 %s165_s3, 6  ;;  %s497_s24 = sshll.u32 %s905_s20, 6 }
  0x4c   : > { %p1138_p12 = por %p122_p10, %p121_p7  ;;  %s169_s21 = scalar_lea.vmem [#allocation5], %s496_s23 }
  0x4d   : > { %s175_s2 = sshll.u32 %s169_s21, 4  ;;  %s1146_s6 = scalar_lea.hbm %s1292_s1, %s497_s24  ;;  %s1148_s2 = int_to_ptr.vmem [resolvable:$true] %s175_s2 }
  0x4e   : > { %s1327_s27 = scalar_select %p1138_p12, 1, 0 }
  0x4f   : > { %p1328_p8 = scmp.lt.s32.totalorder %s913_s22, 6  ;;  %s1158_s21 = scalar_lea.sflag [#allocation6], %s165_s3 }
  0x50   : > { %s733_s29 = scalar_lea.hbm %s1146_s6, 1024  ;;  %s738_s4 = scalar_lea.hbm %s1292_s1, 3072 }
  0x51   : > { %p1154_p9 = pnand %p1328_p8, %p1102_p5  ;;  %p734_p11 = scmp.ne.s32.totalorder %s1146_s6, %s733_s29 }
  0x52   : > { %p739_p5 = scmp.lt.u32.totalorder %s1146_s6, %s1292_s1  ;;  %p740_p3 = scmp.lt.u32.totalorder %s738_s4, %s733_s29 }
  0x53   : > { %p735_p0 = pneg %p1154_p9  ;;  %p742_p10 = scmp.lt.u32.totalorder %s733_s29, %s1146_s6 }
  0x54   : > { %p741_p7 = por %p740_p3, %p739_p5 }
  0x55   : > { %p736_p2 = pnand %p735_p0, %p734_p11 }
  0x56   : > { %p743_p8 = por %p742_p10, %p741_p7 }
  0x57   : > { %p737_p4 = pneg %p736_p2 }
  0x59   : > { %p744_p12 = pnand %p743_p8, %p737_p4 }
  0x5b   : > { %747 = shalt.err (!%p744_p12)
}
  0x5c   : > { %s748_s23 = scalar_lea.vmem %s1148_s2, 1024  ;;  %s918_s25 = smov [#allocation5]  }
  0x5d   : > { %p749_p11 = scmp.ne.s32.totalorder %s1148_s2, %s748_s23  ;;  %s753_s26 = sshll.u32 %s918_s25, 4  ;;  %s754_s26 = int_to_ptr.vmem [resolvable:$false] %s753_s26 }
  0x5e   : > { %s755_s3 = scalar_lea.vmem %s754_s26, 2048  ;;  %p756_p13 = scmp.lt.s32.totalorder %s1148_s2, %s754_s26 }
  0x5f   : > { %p751_p2 = pnand %p749_p11, %p735_p0  ;;  %p757_p5 = scmp.lt.s32.totalorder %s755_s3, %s748_s23 }
  0x61   : > { %p752_p1 = pneg %p751_p2  ;;  %p758_p3 = por %p757_p5, %p756_p13 }
  0x63   : > { %p759_p7 = pnand %p758_p3, %p752_p1 }
  0x65   : > { %762 = shalt.err (!%p759_p7)
}
  0x66   : > { %s919_s29 = smov 192   ;;  %s1330_s18 = smov 4  }
  0x67   : > { %s1331_s24 = smov 64   ;;  %187 = sbr.rel (%p1081_p6) target bundleno = 380 (0x17c), region = 28 }
  0x68   : > { %567 = dma.hbm_to_vmem [thread:$0]  (!%p1154_p9), %s1146_s6, 1024, %s1148_s2, %s1158_s21, %s919_s29, %s1331_s24, %s1330_s18  }
  0x69   : > { %s189_s4 = sand.u32 (!%p1081_p6), 1, %s889_s16   ;;  %p1332_p13 = scmp.ne.s32.totalorder (!%p1081_p6), %s1313_s28, 0 }
  0x6a   : > { %s1191_s15 = sshll.u32 (!%p1081_p6), %s189_s4, 3  ;;  %s190_s8 = scalar_lea.sflag (!%p1081_p6), [#allocation3], %s189_s4 }
  0x6b   : > { %s193_s23 = scalar_lea.vmem (!%p1081_p6), [#allocation2], %s1191_s15 }
  0x6e   : > { %848 = dma.done.wait (%p1332_p13), %s190_s8, 128  }
  0x6f   : > { %850 = vsyncadd (%p1332_p13), %s190_s8, 4294967168  ;;  %s198_s5 = sand.u32 1, %s877_s13   ;;  %p1333_p6 = scmp.ne.s32.totalorder %s1320_s12, 0 }
  0x70   : > { %s500_s2 = sshll.u32 %s198_s5, 6  ;;  %s199_s6 = scalar_lea.sflag [#allocation6], %s198_s5 }
  0x71   : > { %s202_s7 = scalar_lea.vmem [#allocation5], %s500_s2 }
  0x72   : > { %852 = dma.done.wait (%p1333_p6), %s199_s6, 1024  }
  0x73   : > { %854 = vsyncadd (%p1333_p6), %s199_s6, 4294966272  ;;  %v920_v0 = vmov 0.0   ;;  %vm921_vm0 = vmmov 0   ;;  %v694_v1 = vld [vmem:[%s202_s7] sm:$0xff]   ;;  %v695_v2 = vld [vmem:[%s202_s7 + $0x8] sm:$0xff]   ;;  %s1334_s28 = sld [smem:[#allocation11_spill]] }
  0x74   : > { %534 = vmatprep.subr.bf16.mxu0 %v920_v0  ;;  %550 = vmatprep.mubr.msk.bf16.mxu0 %vm921_vm0, %v920_v0  ;;  %v696_v3 = vld [vmem:[%s202_s7 + $0x10] sm:$0xff]   ;;  %v697_v4 = vld [vmem:[%s202_s7 + $0x18] sm:$0xff]   ;;  %v698_v5 = vld [vmem:[%s202_s7 + $0x20] sm:$0xff]   ;;  %s225_s12 = sand.u32 1, %s865_s10   ;;  %s554_s25 = smul.u32 6, %s901_s19 }
  0x75   : > { %535 = vmatpush3.bf16.msra.mxu0 %v694_v1  ;;  %v699_v6 = vld [vmem:[%s202_s7 + $0x28] sm:$0xff]   ;;  %v700_v7 = vld [vmem:[%s202_s7 + $0x30] sm:$0xff]   ;;  %v701_v8 = vld [vmem:[%s202_s7 + $0x38] sm:$0xff]   ;;  %s501_s21 = sshll.u32 %s225_s12, 3  ;;  %s1335_s26 = sld [smem:[#allocation16_spill]] }
  0x76   : > { %536 = vmatprep.subr.bf16.mxu0 %v920_v0  ;;  %v702_v9 = vld [vmem:[%s193_s23] sm:$0xff]   ;;  %s227_s29 = scalar_lea.vmem [#allocation7], %s501_s21  ;;  %s1336_s8 = sld [smem:[#allocation18_spill]] }
  0x77   : > { %s372_s18 = sshll.u32 %s227_s29, 4  ;;  %s1215_s19 = scalar_lea.sflag [#allocation4], %s225_s12  ;;  %s1208_s18 = int_to_ptr.vmem [resolvable:$true] %s372_s18 }
  0x78   : > { %s763_s5 = scalar_lea.vmem %s1208_s18, 128  ;;  %s922_s2 = smov [#allocation7]  }
  0x79   : > { %537 = vmatpush3.bf16.msra.mxu0 %v695_v2  ;;  %s369_s3 = sadd.s32 %s1334_s28, %s554_s25  ;;  %p764_p1 = scmp.ne.s32.totalorder %s1208_s18, %s763_s5 }
  0x7a   : > { %538 = vmatprep.subr.bf16.mxu0 %v920_v0  ;;  %s514_s24 = sshll.u32 %s369_s3, 6  ;;  %s767_s6 = sshll.u32 %s922_s2, 4  ;;  %s768_s6 = int_to_ptr.vmem [resolvable:$false] %s767_s6 }
  0x7b   : > { %p1337_p12 = scmp.ne.s32.totalorder %s1335_s26, 0  ;;  %s769_s7 = scalar_lea.vmem %s768_s6, 256 }
  0x7c   : > { %s1213_s23 = scalar_lea.hbm %s1336_s8, %s514_s24  ;;  %p770_p4 = scmp.lt.s32.totalorder %s1208_s18, %s768_s6 }
  0x7d   : > { %539 = vmatpush3.bf16.msra.mxu0 %v696_v3  ;;  %p765_p9 = pnand %p764_p1, %p1337_p12  ;;  %p771_p10 = scmp.lt.s32.totalorder %s769_s7, %s763_s5 }
  0x7e   : > { %540 = vmatprep.subr.bf16.mxu0 %v920_v0 }
  0x7f   : > { %p766_p0 = pneg %p765_p9  ;;  %p772_p8 = por %p771_p10, %p770_p4 }
  0x81   : > { %541 = vmatpush3.bf16.msra.mxu0 %v697_v4  ;;  %p773_p11 = pnand %p772_p8, %p766_p0 }
  0x82   : > { %542 = vmatprep.subr.bf16.mxu0 %v920_v0 }
  0x85   : > { %543 = vmatpush3.bf16.msra.mxu0 %v698_v5 }
  0x86   : > { %544 = vmatprep.subr.bf16.mxu0 %v920_v0 }
  0x89   : > { %545 = vmatpush3.bf16.msra.mxu0 %v699_v6 }
  0x8a   : > { %546 = vmatprep.subr.bf16.mxu0 %v920_v0 }
  0x8d   : > { %547 = vmatpush3.bf16.msra.mxu0 %v700_v7 }
  0x8e   : > { %548 = vmatprep.subr.bf16.mxu0 %v920_v0 }
  0x91   : > { %549 = vmatpush3.bf16.msra.mxu0 %v701_v8 }
  0x94   : > { %551 = vmatmul.mubr.bf16.vlgmr.msra.gmra.mrb[0].mxu0 %v702_v9 }
 0x167   : > { %v337_v10 = vpop.f32.mrb[0].mxu0 }
 0x168   : > { %v552_v11 = vpop.f32.mrb[1].mxu0 }
 0x169   : > { %v340_v12 = vpop.f32.mrb[2].mxu0 }
 0x16a   : > { %v523_v13 = vpack.c.bf16 %v340_v12, %v337_v10  ;;  %v553_v14 = vpop.f32.mrb[3].mxu0 }
 0x16c   : > { %524 = vst [vmem:[%s227_s29] sm:$0xff] %v523_v13  }
 0x16d   : > { %776 = shalt.err (!%p773_p11)
}
 0x16e   : > { %s777_s28 = scalar_lea.hbm %s1213_s23, 128  ;;  %s781_s25 = scalar_lea.hbm %s1336_s8, 768 }
 0x16f   : > { %p778_p2 = scmp.ne.s32.totalorder %s1213_s23, %s777_s28  ;;  %p782_p7 = scmp.lt.u32.totalorder %s1213_s23, %s1336_s8 }
 0x170   : > { %p783_p13 = scmp.lt.u32.totalorder %s781_s25, %s777_s28  ;;  %p785_p1 = scmp.lt.u32.totalorder %s777_s28, %s1213_s23 }
 0x171   : > { %p779_p5 = pnand %p778_p2, %p1337_p12 }
 0x172   : > { %p784_p6 = por %p783_p13, %p782_p7 }
 0x173   : > { %p780_p3 = pneg %p779_p5 }
 0x174   : > { %p786_p9 = por %p785_p1, %p784_p6 }
 0x176   : > { %p787_p0 = pnand %p786_p9, %p780_p3 }
 0x178   : > { %790 = shalt.err (!%p787_p0)
}
 0x179   : > { %s923_s24 = smov 64   ;;  %s924_s4 = smov 192  }
 0x17a   : > { %s925_s15 = smov 4  }
 0x17b   : > { %559 = dma.vmem_to_hbm [thread:$0]  (%p1337_p12), %s1208_s18, 128, %s1213_s23, %s1215_s19, %s923_s24, %s924_s4, %s925_s15  }
 0x17c PF: > { %p573_p4 = scmp.ge.s32.totalorder %s913_s22, 2  ;;  %s387_s5 = sand.u32 1, %s861_s9  }
 0x17d   : > { %p1338_p10 = scmp.ne.s32.totalorder %s1327_s27, 0  ;;  %s388_s2 = scalar_lea.sflag [#allocation4], %s387_s5 }
 0x17f   : > { %p569_p8 = pnand %p573_p4, %p1338_p10 }
 0x181   : > { %856 = dma.done.wait (!%p569_p8), %s388_s2, 128  }
 0x182   : > { %858 = vsyncadd (!%p569_p8), %s388_s2, 4294967168  ;;  %s21_s22 = sadd.s32 1, %s913_s22   ;;  %s1340_s26 = sld [smem:[#allocation15_spill]] }
 0x183   : > { %p1244_p11 = scmp.ge.s32.totalorder %s21_s22, 8   ;;  %s1341_s19 = sld [smem:[#allocation12_spill]] }
 0x184   : > { %s1342_s27 = sld [smem:[#allocation13_spill]]  ;;  %s1343_s21 = sld [smem:[#allocation14_spill]] }
 0x185   : > { %s1344_s9 = smov %s865_s10  ;;  %s1345_s10 = smov %s869_s11 }
 0x186   : > { %s1346_s11 = smov %s1135_s30  ;;  %s1347_s12 = smov %s877_s13 }
 0x187   : > { %s1348_s13 = smov %s881_s14  ;;  %s1350_s15 = smov %s889_s16 }
 0x188   : > { %s1349_s14 = smov %s1340_s26  ;;  %s1351_s16 = smov %s893_s17 }
 0x189   : > { %s1352_s17 = smov %s1132_s0  ;;  %s1353_s18 = smov %s905_s20 }
 0x18a   : > { %s1354_s20 = smov %s1342_s27  ;;  %20 = sbr.rel (!%p1244_p11) target bundleno = 15 (0xf), region = 86 }
 0x191   :  { %393 = vsyncpa [#allocation3], 1 }
 0x192   :  { %395 = vsyncpa [#allocation3 + $0x1], 1 }
 0x193   :  { %396 = vsyncpa [#allocation6], 1 }
 0x194   :  { %398 = vsyncpa [#allocation6 + $0x1], 1 }
 0x195   :  { %399 = vsyncpa [#allocation4], 1 }
 0x196   :  { %401 = vsyncpa [#allocation4 + $0x1], 1 }

</bundles_post_ra>
